<compile_context>
chip_gen: v7x
topology: tpu7x:2x2x1
jax: 0.10.0
libtpu: 0.0.40
codegen_flags: <defaults>
</compile_context>

<pallas_src>
import jax
import jax.numpy as jnp
from jax.experimental import pallas as pl
from jax.experimental.pallas import tpu as pltpu

_LANE = 128


def _mlp_kernel(x_ref, ws_ref, bs_ref, w1_ref, b1_ref, w2_ref, b2_ref,
                wf_ref, bf_ref, o_ref):
    # x_ref: (state_dim, T) — batch on lanes.
    a0 = x_ref[...]
    z1 = jnp.maximum(
        jnp.dot(ws_ref[...], a0, preferred_element_type=jnp.float32)
        + bs_ref[...], 0.0)                                    # (16, T)
    z2 = jnp.maximum(
        jnp.dot(w1_ref[...], z1, preferred_element_type=jnp.float32)
        + b1_ref[...], 0.0)                                    # (8, T)
    z3 = jnp.maximum(
        jnp.dot(w2_ref[...], z2, preferred_element_type=jnp.float32)
        + b2_ref[...], 0.0)                                    # (4, T)
    # Final 4 -> 1 layer on VPU + sublane reduce (a K=4/N=1 MXU matmul would
    # waste >99% of the systolic array and still pay MXU latency).
    o_ref[...] = (jnp.sum(wf_ref[...] * z3, axis=0, keepdims=True)
                  + bf_ref[...])                               # (1, T)


def reward_value_net_pallas(X, params, state_dim, *, batch_tile=512):
    """RewardValueNet forward pass. Returns (B, 1) float32."""
    assert batch_tile % _LANE == 0, "batch_tile must be a multiple of 128"
    ws, bs, w1, b1, w2, b2, wf, bf = params
    B = X.shape[0]

    # Pick n_tiles / padded batch so that tile is a multiple of 128 and
    # tile * n_tiles == B_pad (keeps padding small when B isn't a multiple
    # of batch_tile, and gives grid >= 2 whenever B > batch_tile).
    n_tiles = -(-B // batch_tile)          # ceil(B / batch_tile)
    granule = _LANE * n_tiles
    B_pad = -(-B // granule) * granule
    tile = B_pad // n_tiles

    # Slice the state columns, put batch on the lane axis, pad lanes only if
    # needed (XLA fuses slice+transpose+pad into one pass over the tiny slab).
    xt = X[:, :state_dim].T                # (state_dim, B)
    if B_pad != B:
        xt = jnp.pad(xt, ((0, 0), (0, B_pad - B)))

    param_args = (ws, bs, w1, b1, w2, b2, wf, bf)
    out_shape = jax.ShapeDtypeStruct((1, B_pad), jnp.float32)

    if n_tiles == 1:
        # Gridless fast path: one invocation, everything resident in VMEM.
        out = pl.pallas_call(_mlp_kernel, out_shape=out_shape)(xt, *param_args)
    else:
        def const_spec(shape):
            # Params: one full block, same for every grid step (fetched once).
            return pl.BlockSpec(shape, lambda i: (0, 0))

        out = pl.pallas_call(
            _mlp_kernel,
            out_shape=out_shape,
            grid_spec=pltpu.PrefetchScalarGridSpec(
                num_scalar_prefetch=0,
                grid=(n_tiles,),
                in_specs=[pl.BlockSpec((state_dim, tile), lambda i: (0, i))]
                         + [const_spec(p.shape) for p in param_args],
                out_specs=pl.BlockSpec((1, tile), lambda i: (0, i)),
            ),
            compiler_params=pltpu.CompilerParams(
                dimension_semantics=("parallel",)),
        )(xt, *param_args)

    # (1, B_pad) row-major data == (B_pad, 1); drop padded rows.
    return out.reshape(B_pad, 1)[:B]


def init_params(key, state_dim):
    """Deterministic init mirroring nn.Linear shapes.

    Layers S/L1/L2 are stored as (out, in) weights with (out, 1) biases
    (transposed-activation layout); the final 4->1 layer is stored as a
    (4, 1) weight column and (1, 1) bias for the in-kernel VPU reduce.
    """
    dims = [(state_dim, 16), (16, 8), (8, 4), (4, 1)]
    params = []
    for idx, (fan_in, fan_out) in enumerate(dims):
        kw, kb = jax.random.split(jax.random.fold_in(key, idx))
        bound = 1.0 / jnp.sqrt(jnp.float32(fan_in))
        if idx < 3:
            w = jax.random.uniform(kw, (fan_out, fan_in), jnp.float32, -bound, bound)
        else:
            w = jax.random.uniform(kw, (fan_in, fan_out), jnp.float32, -bound, bound)
        b = jax.random.uniform(kb, (fan_out, 1), jnp.float32, -bound, bound)
        params.extend([w, b])
    return tuple(params)


def reward_value_net_ref(X, params, state_dim):
    """Pure-JAX reference with identical semantics to the PyTorch module."""
    ws, bs, w1, b1, w2, b2, wf, bf = params
    s = X[:, :state_dim]
    y1 = jax.nn.relu(s @ ws.T + bs.T)
    l1 = jax.nn.relu(y1 @ w1.T + b1.T)
    l2 = jax.nn.relu(l1 @ w2.T + b2.T)
    return l2 @ wf + bf.T


if __name__ == "__main__":
    STATE_DIM = 6
    EXTRA_COLS = 4   # X may carry extra (action etc.) columns; forward slices them off.

    key = jax.random.PRNGKey(0)
    k_x, k_p, k_x2 = jax.random.split(key, 3)
    params = init_params(k_p, STATE_DIM)

    # Small batch -> gridless fast path.
    X_small = jax.random.normal(k_x, (8, STATE_DIM + EXTRA_COLS), jnp.float32)
    out_small = jax.block_until_ready(
        reward_value_net_pallas(X_small, params, STATE_DIM))
    ref_small = reward_value_net_ref(X_small, params, STATE_DIM)
    assert out_small.shape == (8, 1), out_small.shape
    assert jnp.allclose(out_small, ref_small, atol=1e-5, rtol=1e-5), (
        out_small, ref_small)

    # Ragged larger batch -> tiled grid path (3 parallel steps of 128 lanes).
    X_big = jax.random.normal(k_x2, (300, STATE_DIM + EXTRA_COLS), jnp.float32)
    out_big = jax.block_until_ready(
        reward_value_net_pallas(X_big, params, STATE_DIM, batch_tile=128))
    ref_big = reward_value_net_ref(X_big, params, STATE_DIM)
    assert out_big.shape == (300, 1), out_big.shape
    assert jnp.allclose(out_big, ref_big, atol=1e-5, rtol=1e-5), (
        out_big, ref_big)

    print("KERNEL_OK")
</pallas_src>

<mosaic_0001>
module attributes {stable_mosaic.version = 11 : i64} {
  func.func @_mlp_kernel(%arg0: memref<6x128xf32, #tpu.memory_space<vmem>>, %arg1: memref<16x6xf32, #tpu.memory_space<vmem>>, %arg2: memref<16x1xf32, #tpu.memory_space<vmem>>, %arg3: memref<8x16xf32, #tpu.memory_space<vmem>>, %arg4: memref<8x1xf32, #tpu.memory_space<vmem>>, %arg5: memref<4x8xf32, #tpu.memory_space<vmem>>, %arg6: memref<4x1xf32, #tpu.memory_space<vmem>>, %arg7: memref<4x1xf32, #tpu.memory_space<vmem>>, %arg8: memref<1x1xf32, #tpu.memory_space<vmem>>, %arg9: memref<1x128xf32, #tpu.memory_space<vmem>>) attributes {dimension_semantics = [], scalar_prefetch = 0 : i64, scratch_operands = 0 : i64, tpu.core_type = #tpu.core_type<tc>} {
    %c0 = arith.constant 0 : index
    %c0_0 = arith.constant 0 : index
    %0 = vector.load %arg0[%c0, %c0_0] : memref<6x128xf32, #tpu.memory_space<vmem>>, vector<6x128xf32>
    %c0_1 = arith.constant 0 : index
    %c0_2 = arith.constant 0 : index
    %1 = vector.load %arg1[%c0_1, %c0_2] : memref<16x6xf32, #tpu.memory_space<vmem>>, vector<16x6xf32>
    %cst = arith.constant dense<0.000000e+00> : vector<16x128xf32>
    %2 = tpu.matmul %1, %0, %cst {dimension_numbers = #tpu.dot_dimension_numbers<[1], [0], [0], [1], [0, 0, 1, 1], [], []>} : vector<16x6xf32>, vector<6x128xf32>, vector<16x128xf32> -> vector<16x128xf32>
    %c0_3 = arith.constant 0 : index
    %c0_4 = arith.constant 0 : index
    %3 = vector.load %arg2[%c0_3, %c0_4] : memref<16x1xf32, #tpu.memory_space<vmem>>, vector<16x1xf32>
    %4 = vector.broadcast %3 : vector<16x1xf32> to vector<16x128xf32>
    %5 = arith.addf %2, %4 : vector<16x128xf32>
    %cst_5 = arith.constant 0.000000e+00 : f32
    %6 = vector.broadcast %cst_5 : f32 to vector<16x128xf32>
    %7 = arith.maximumf %5, %6 : vector<16x128xf32>
    %c0_6 = arith.constant 0 : index
    %c0_7 = arith.constant 0 : index
    %8 = vector.load %arg3[%c0_6, %c0_7] : memref<8x16xf32, #tpu.memory_space<vmem>>, vector<8x16xf32>
    %cst_8 = arith.constant dense<0.000000e+00> : vector<8x128xf32>
    %9 = tpu.matmul %8, %7, %cst_8 {dimension_numbers = #tpu.dot_dimension_numbers<[1], [0], [0], [1], [0, 0, 1, 1], [], []>} : vector<8x16xf32>, vector<16x128xf32>, vector<8x128xf32> -> vector<8x128xf32>
    %c0_9 = arith.constant 0 : index
    %c0_10 = arith.constant 0 : index
    %10 = vector.load %arg4[%c0_9, %c0_10] : memref<8x1xf32, #tpu.memory_space<vmem>>, vector<8x1xf32>
    %11 = vector.broadcast %10 : vector<8x1xf32> to vector<8x128xf32>
    %12 = arith.addf %9, %11 : vector<8x128xf32>
    %cst_11 = arith.constant 0.000000e+00 : f32
    %13 = vector.broadcast %cst_11 : f32 to vector<8x128xf32>
    %14 = arith.maximumf %12, %13 : vector<8x128xf32>
    %c0_12 = arith.constant 0 : index
    %c0_13 = arith.constant 0 : index
    %15 = vector.load %arg5[%c0_12, %c0_13] : memref<4x8xf32, #tpu.memory_space<vmem>>, vector<4x8xf32>
    %cst_14 = arith.constant dense<0.000000e+00> : vector<4x128xf32>
    %16 = tpu.matmul %15, %14, %cst_14 {dimension_numbers = #tpu.dot_dimension_numbers<[1], [0], [0], [1], [0, 0, 1, 1], [], []>} : vector<4x8xf32>, vector<8x128xf32>, vector<4x128xf32> -> vector<4x128xf32>
    %c0_15 = arith.constant 0 : index
    %c0_16 = arith.constant 0 : index
    %17 = vector.load %arg6[%c0_15, %c0_16] : memref<4x1xf32, #tpu.memory_space<vmem>>, vector<4x1xf32>
    %18 = vector.broadcast %17 : vector<4x1xf32> to vector<4x128xf32>
    %19 = arith.addf %16, %18 : vector<4x128xf32>
    %cst_17 = arith.constant 0.000000e+00 : f32
    %20 = vector.broadcast %cst_17 : f32 to vector<4x128xf32>
    %21 = arith.maximumf %19, %20 : vector<4x128xf32>
    %c0_18 = arith.constant 0 : index
    %c0_19 = arith.constant 0 : index
    %22 = vector.load %arg7[%c0_18, %c0_19] : memref<4x1xf32, #tpu.memory_space<vmem>>, vector<4x1xf32>
    %23 = vector.broadcast %22 : vector<4x1xf32> to vector<4x128xf32>
    %24 = arith.mulf %23, %21 : vector<4x128xf32>
    %cst_20 = arith.constant dense<0.000000e+00> : vector<128xf32>
    %25 = vector.multi_reduction <add>, %24, %cst_20 [0] : vector<4x128xf32> to vector<128xf32>
    %26 = vector.shape_cast %25 : vector<128xf32> to vector<1x128xf32>
    %c0_21 = arith.constant 0 : index
    %c0_22 = arith.constant 0 : index
    %27 = vector.load %arg8[%c0_21, %c0_22] : memref<1x1xf32, #tpu.memory_space<vmem>>, vector<1x1xf32>
    %28 = vector.broadcast %27 : vector<1x1xf32> to vector<1x128xf32>
    %29 = arith.addf %26, %28 : vector<1x128xf32>
    %c0_23 = arith.constant 0 : index
    %c0_24 = arith.constant 0 : index
    %30 = vector.load %arg9[%c0_23, %c0_24] : memref<1x128xf32, #tpu.memory_space<vmem>>, vector<1x128xf32>
    tpu.vector_store %arg9[%c0_23, %c0_24], %29 {strides = array<i32>} : memref<1x128xf32, #tpu.memory_space<vmem>>, vector<1x128xf32>,
    return
  }
}

</mosaic_0001>

<bundles_post_ra>
// kernel: tpu_custom_call.1
= control target key start
LH: loop header
LB: loop body
LE: loop exit
PB: predicated region body
PF: predicated region fallthrough
CT: control target
= control target key end

     0   :  { %s507_s0 = inlined_call_operand.vmem [shape: f32[6,128], index: 0, kind: input, shape index: {}]   ;;  %s508_s1 = inlined_call_operand.vmem [shape: f32[16,6], index: 1, kind: input, shape index: {}]   ;;  %s509_s2 = inlined_call_operand.vmem [shape: f32[16,1], index: 2, kind: input, shape index: {}]   ;;  %s510_s3 = inlined_call_operand.vmem [shape: f32[8,16], index: 3, kind: input, shape index: {}]   ;;  %s511_s4 = inlined_call_operand.vmem [shape: f32[8,1], index: 4, kind: input, shape index: {}]   ;;  %s512_s5 = inlined_call_operand.vmem [shape: f32[4,8], index: 5, kind: input, shape index: {}]   ;;  %s513_s6 = inlined_call_operand.vmem [shape: f32[4,1], index: 6, kind: input, shape index: {}]   ;;  %s514_s7 = inlined_call_operand.vmem [shape: f32[4,1], index: 7, kind: input, shape index: {}]   ;;  %s515_s8 = inlined_call_operand.<no memory space> [shape: f32[1,1], index: 8, kind: input, shape index: {}]   ;;  %s516_s9 = inlined_call_operand.hbm [shape: f32[1,128], index: 9, kind: output, shape index: {}]  }
   0x1   :  { %v14_v0 = vstv %s515_s8 }
   0x2   :  { %15 = vst [vmem:[#allocation2] sm:$0x1] %v14_v0 }
   0x3   :  { %v35_v1 = vld [vmem:[%s507_s0] sm:$0x3f]  ;;  %vm57_vm0 = vcmask 1045504   ;;  %vm50_vm1 = vcmask 48128   ;;  %v37_v3 = vld [vmem:[%s508_s1 + $0x8] sm:$0xff]  ;;  %v407_v5 = vmov 0  }
   0x4   :  { %v36_v2 = vld [vmem:[%s508_s1] sm:$0xff]  ;;  %356 = vmatprep.subr.msk.mxu0 %vm57_vm0, %v35_v1  ;;  %381 = vset.pattern.permute.xlu0 %v407_v5 }
   0x5   :  { %358 = vmatprep.mubr.msk.f32.mxu0 %vm50_vm1, %v36_v2  ;;  %v38_v4 = vld [vmem:[%s509_s2] sm:$0xff]  ;;  %357 = vmatpush3.msk.msra.mxu0 %vm57_vm0, %v35_v1 }
   0x6   :  { %16 = vsyncpa [#allocation4], 0  ;;  %359 = vmatmul.mubr.msk.f32.vlgmr.msra.gmra.mrb[0].mxu0 %vm50_vm1, %v37_v3  ;;  %42 = vperm.xlu0 %381, %v38_v4   ;;  %v39_v6 = vld [vmem:[%s509_s2 + $0x8] sm:$0xff]  ;;  %v302_v7 = vld [vmem:[%s514_s7] sm:$0xf]  ;;  %v408_v8 = vmov 0.0|0.0   ;;  %v323_v36 = vlaneseq }
   0x7   :  { %382 = vset.pattern.permute.xlu1 %v407_v5  ;;  %373 = vmatprep.subr.bf16.mxu1 %v408_v8  ;;  %vm409_vm2 = vmmov 0   ;;  %v410_v9 = vmov 0.0   ;;  %v139_v10 = vld [vmem:[%s511_s4] sm:$0xff]  ;;  %vm145_vm3 = vcmask 130048   ;;  %vm227_vm4 = vcmask 64512  }
   0x8   :  { %365 = vmatprep.mubr.msk.f32.mxu1 %vm409_vm2, %v410_v9  ;;  %368 = vmatprep.subr.mxu0 %v410_v9  ;;  %v221_v11 = vld [vmem:[%s513_s6] sm:$0xf]  ;;  %vm309_vm5 = vcmask 1043456   ;;  %v324_v39 = vshrl.u32 %v323_v36, 7 }
   0x9   :  { %370 = vmatprep.mubr.msk.f32.mxu0 %vm409_vm2, %v410_v9  ;;  %142 = vperm.xlu1 %382, %v139_v10   ;;  %v317_v12 = vld [vmem:[#allocation2] sm:$0x1] }
   0xa   :  { %47 = vperm.xlu0 %381, %v39_v6   ;;  %v138_v22 = vld [vmem:[%s510_s3] sm:$0xff]  ;;  %v325_v42 = vsub.s32 0, %v324_v39  ;;  %s411_s3 = smov [#allocation3]  }
   0xb   :  { %v220_v28 = vld [vmem:[%s512_s5] sm:$0xf]  ;;  %s335_s5 = sshll.u32 %s411_s3, 4  ;;  %s336_s5 = int_to_ptr.vmem [resolvable:$true] %s335_s5 }
   0xc   :  { %s383_s24 = scalar_lea.vmem %s336_s5, 16  ;;  %s387_s25 = scalar_lea.vmem %s336_s5, 32 }
   0xd   :  { %224 = vperm.xlu1 %382, %v221_v11   ;;  %p384_p0 = scmp.ne.s32.totalorder %s336_s5, %s383_s24  ;;  %p388_p1 = scmp.lt.s32.totalorder %s336_s5, %s336_s5 }
   0xe   :  { %305 = vperm.xlu0 %381, %v302_v7   ;;  %p389_p2 = scmp.lt.s32.totalorder %s387_s25, %s383_s24 }
  0x10   :  { %p390_p3 = por %p389_p2, %p388_p1 }
  0x11   :  { %320 = vperm.xlu1 %382, %v317_v12  }
  0x12   :  { %p391_p4 = pnand %p390_p3, %p384_p0 }
  0x85   :  { %v43_v13 = vpop.permute.xlu0 %42 }
  0x88   :  { %v143_v23 = vpop.permute.xlu1 %142 }
  0x89   :  { %v48_v14 = vpop.permute.xlu0 %47 }
  0x8c   :  { %v225_v29 = vpop.permute.xlu1 %224 }
  0x8d   :  { %v306_v34 = vpop.permute.xlu0 %305 }
  0x90   :  { %v321_v44 = vpop.permute.xlu1 %320 }
  0x91   :  { %v326_v46 = vrot.slane %v321_v44, %v325_v42 }
  0xd9   :  { %v360_v15 = vpop.f32.mrb[0].mxu0 }
  0xda   :  { %v133_v16 = vadd.f32 %v360_v15, %v48_v14  ;;  %v127_v17 = vpop.f32.mrb[1].mxu0 }
  0xdb   :  { %v128_v18 = vadd.f32 %v127_v17, %v43_v13 }
  0xdc   :  { %v137_v19 = vmax.f32 %v133_v16, 0.0 }
  0xdd   :  { %v136_v20 = vmax.f32 %v128_v18, 0.0 }
  0xdf   :  { %v374_v21 = vpack.c.bf16 %v137_v19, %v136_v20 }
  0xe1   :  { %375 = vmatpush3.bf16.msra.mxu1 %v374_v21 }
  0xe4   :  { %366 = vmatmul.mubr.msk.f32.vlgmr.msra.gmra.mrb[0].mxu1 %vm145_vm3, %v138_v22 }
 0x1b7   :  { %v215_v24 = vpop.f32.mrb[0].mxu1 }
 0x1b8   :  { %v216_v25 = vadd.f32 %v215_v24, %v143_v23  ;;  %v367_v26 = vpop.f32.mrb[1].mxu1 }
 0x1ba   :  { %v219_v27 = vmax.f32 %v216_v25, 0.0 }
 0x1bc   :  { %369 = vmatpush3.msra.mxu0 %v219_v27 }
 0x1bd   :  { %371 = vmatmul.mubr.msk.f32.vlgmr.msra.gmra.mrb[2].mxu0 %vm227_vm4, %v220_v28 }
 0x290   :  { %v297_v30 = vpop.f32.mrb[2].mxu0 }
 0x291   :  { %v298_v31 = vadd.f32 %v297_v30, %v225_v29  ;;  %v372_v32 = vpop.f32.mrb[3].mxu0 }
 0x293   :  { %v301_v33 = vmax.f32 %v298_v31, 0.0 }
 0x295   :  { %v308_v35 = vmul.f32 %v306_v34, %v301_v33 }
 0x297   :  { %v310_v37 = vsel %vm309_vm5, %v308_v35, 0.0 }
 0x298   :  { %v311_v38 = vrot.slane %v310_v37, 4 }
 0x29a   :  { %v312_v40 = vadd.f32 %v311_v38, %v310_v37 }
 0x29c   :  { %v313_v41 = vrot.slane %v312_v40, 2 }
 0x29e   :  { %v314_v43 = vadd.f32 %v313_v41, %v312_v40 }
 0x2a0   :  { %v315_v45 = vrot.slane %v314_v43, 1 }
 0x2a2   :  { %v316_v47 = vadd.f32 %v315_v45, %v314_v43 }
 0x2a4   :  { %v327_v48 = vadd.f32 %v326_v46, %v316_v47 }
 0x2a6   :  { %328 = vst [vmem:[#allocation3] sm:$0x1] %v327_v48 }
 0x2a7   :  { %394 = shalt.err (!%p391_p4)
}
 0x2a8   :  { %s395_s28 = scalar_lea.hbm %s516_s9, 16 }
 0x2a9   :  { %p396_p5 = scmp.ne.s32.totalorder %s516_s9, %s395_s28  ;;  %p399_p6 = scmp.lt.u32.totalorder %s395_s28, %s516_s9 }
 0x2ab   :  { %p401_p7 = pnand %p399_p6, %p396_p5 }
 0x2ad   :  { %404 = shalt.err (!%p401_p7)
}
 0x2ae   :  { %338 = dma.vmem_to_hbm [thread:$0]  %s336_s5, 16, %s516_s9, [#allocation4]  }
 0x2af   :  { %405 = dma.done.wait [#allocation4], 16  }
 0x2b0   :  { %406 = vsyncadd [#allocation4], 4294967280 }
 0x2b1   :  { %342 = vsyncpa [#allocation4], 1 }

</bundles_post_ra>
